<compile_context>
chip_gen: v5e
topology: v5e:2x2
jax: 0.10.0
libtpu: 0.0.40
codegen_flags: <defaults>
</compile_context>

<pallas_src>
import functools

import numpy as np

import jax
import jax.numpy as jnp
from jax.experimental import pallas as pl
from jax.experimental.pallas import tpu as pltpu


# --------------------------------------------------------------------------
# One-time, host-side check of pltpu.roll's shift-sign convention so the tap
# shifts below are correct regardless of the installed JAX version.
# --------------------------------------------------------------------------
_ROLL_LIKE_JNP = None


def _roll_like_jnp():
    global _ROLL_LIKE_JNP
    if _ROLL_LIKE_JNP is None:
        def probe(x_ref, o_ref):
            o_ref[...] = pltpu.roll(x_ref[...], shift=1, axis=1)

        x = jnp.tile(jnp.arange(128, dtype=jnp.float32)[None, :], (8, 1))
        y = pl.pallas_call(
            probe, out_shape=jax.ShapeDtypeStruct((8, 128), jnp.float32))(x)
        # jnp.roll convention: out[i] = in[(i - shift) % n] -> lane 0 holds 127.
        _ROLL_LIKE_JNP = bool(float(y[0, 0]) > 64.0)
    return _ROLL_LIKE_JNP


# --------------------------------------------------------------------------
# Static per-tap roll amounts + 0/1 validity masks on the (H, W) lane canvas.
# Output position p = h*W + w of a stride-1 conv reads the canvas at
# p + (kh-P)*W + (kw-P); the mask zeroes reads that fall outside the layer's
# valid input region [0,Hi) x [0,Wi) (this *is* the zero padding).
# --------------------------------------------------------------------------
def _make_taps(Hc, Wc, Hi, Wi, K, P, roll_like_jnp):
    HWc = Hc * Wc
    hh = np.arange(Hc)[:, None]
    ww = np.arange(Wc)[None, :]
    shifts, masks = [], []
    for kh in range(K):
        for kw in range(K):
            off = (kh - P) * Wc + (kw - P)           # source = canvas[p + off]
            s = (-off) % HWc if roll_like_jnp else off % HWc
            shifts.append(int(s))
            src_h = hh + (kh - P)
            src_w = ww + (kw - P)
            valid = (src_h >= 0) & (src_h < Hi) & (src_w >= 0) & (src_w < Wi)
            masks.append(valid.astype(np.float32).reshape(HWc))
    return tuple(shifts), np.stack(masks, axis=0)


def _pick_block_batch(N, cap):
    # Largest divisor of N that (a) keeps >= 2 grid steps when N >= 2 so both
    # v7x TensorCores get work, and (b) stays <= cap to bound the static
    # per-element unroll inside the kernel.
    limit = max(1, min(cap, N // 2 if N >= 2 else 1))
    for nb in range(limit, 0, -1):
        if N % nb == 0:
            return nb
    return 1


# --------------------------------------------------------------------------
# Kernel
# --------------------------------------------------------------------------
def _conv_layer(x_cs, w_ref, b_ref, m_ref, shifts, neg_slope):
    """Stride-1 conv + bias + (leaky-)ReLU, channels-first on the lane canvas.

    x_cs:  (Cin, H*W) f32 value, spatial flattened on lanes.
    w_ref: (K*K, Cout, Cin) per-tap weight matrices (resident).
    b_ref: (Cout, 1) bias.
    m_ref: (K*K, H*W) per-tap 0/1 validity masks.
    Returns (Cout, H*W); values outside the layer's valid output region are
    garbage and are masked by the next layer / cropped by the wrapper.
    """
    acc = None
    for t, s in enumerate(shifts):
        src = x_cs if s == 0 else pltpu.roll(x_cs, shift=s, axis=1)   # XLU
        tap = src * m_ref[pl.ds(t, 1), :]                             # VPU
        y = jnp.dot(w_ref[t], tap, preferred_element_type=jnp.float32)  # MXU
        acc = y if acc is None else acc + y
    acc = acc + b_ref[...]
    return jnp.where(acc >= 0, acc, neg_slope * acc)


def _disc_kernel(x_ref, w1_ref, b1_ref, w2_ref, b2_ref, m1_ref, m2_ref, o_ref,
                 *, nb, shifts1, shifts2, neg_slope):
    # x_ref: (nb, C1, H*W)   o_ref: (nb, C1, H*W)   (lane-dense, NCHW-flat)
    for n in range(nb):                        # small static unroll (nb <= cap)
        x = x_ref[n]                           # (C1, H*W)
        y1 = _conv_layer(x, w1_ref, b1_ref, m1_ref, shifts1, neg_slope)
        y2 = _conv_layer(y1, w2_ref, b2_ref, m2_ref, shifts2, neg_slope)
        o_ref[n] = y2.astype(o_ref.dtype)


# --------------------------------------------------------------------------
# Wrapper
# --------------------------------------------------------------------------
def _forward_impl(x_nchw, w1t, b1, w2t, b2, *, K1, P1, K2, P2, neg_slope,
                  roll_like_jnp, nb_cap=8):
    N, C1, H, W = x_nchw.shape
    C2 = w1t.shape[1]
    HW = H * W
    Ho1, Wo1 = H + 2 * P1 - K1 + 1, W + 2 * P1 - K1 + 1
    Ho2, Wo2 = Ho1 + 2 * P2 - K2 + 1, Wo1 + 2 * P2 - K2 + 1
    # TODO(synk): convs whose (intermediate) output is larger than the input
    # H x W canvas (i.e. 2*P > K-1) would need a bigger canvas; not implemented.
    if not (1 <= Ho1 <= H and 1 <= Wo1 <= W and 1 <= Ho2 <= H and 1 <= Wo2 <= W):
        raise NotImplementedError(
            "conv outputs must fit on the input HxW canvas (2*P <= K-1 style)")

    shifts1, m1 = _make_taps(H, W, H, W, K1, P1, roll_like_jnp)
    shifts2, m2 = _make_taps(H, W, Ho1, Wo1, K2, P2, roll_like_jnp)

    nb = _pick_block_batch(N, nb_cap)
    kernel = functools.partial(_disc_kernel, nb=nb, shifts1=shifts1,
                               shifts2=shifts2, neg_slope=float(neg_slope))

    x3 = x_nchw.reshape(N, C1, HW)        # free: contiguous last-dim merge

    out = pl.pallas_call(
        kernel,
        out_shape=jax.ShapeDtypeStruct((N, C1, HW), x_nchw.dtype),
        grid_spec=pltpu.PrefetchScalarGridSpec(
            num_scalar_prefetch=0,
            grid=(N // nb,),                         # >= 2 parallel steps, N>=2
            in_specs=[
                pl.BlockSpec((nb, C1, HW), lambda g: (g, 0, 0)),
                pl.BlockSpec((K1 * K1, C2, C1), lambda g: (0, 0, 0)),
                pl.BlockSpec((C2, 1), lambda g: (0, 0)),
                pl.BlockSpec((K2 * K2, C1, C2), lambda g: (0, 0, 0)),
                pl.BlockSpec((C1, 1), lambda g: (0, 0)),
                pl.BlockSpec((K1 * K1, HW), lambda g: (0, 0)),
                pl.BlockSpec((K2 * K2, HW), lambda g: (0, 0)),
            ],
            out_specs=pl.BlockSpec((nb, C1, HW), lambda g: (g, 0, 0)),
        ),
        compiler_params=pltpu.CompilerParams(
            dimension_semantics=("parallel",)),      # v7x: 2 TCs split the grid
    )(x3, w1t, b1.reshape(C2, 1), w2t, b2.reshape(C1, 1),
      jnp.asarray(m1), jnp.asarray(m2))

    out = out.reshape(N, C1, H, W)                   # free reshape -> NCHW
    if (Ho2, Wo2) != (H, W):                         # non-"same": crop canvas
        out = out[:, :, :Ho2, :Wo2]
    return out


_forward = jax.jit(
    _forward_impl,
    static_argnames=("K1", "P1", "K2", "P2", "neg_slope",
                     "roll_like_jnp", "nb_cap"))


class DiscriminatorPallas:
    """Pallas port of the view-specific Discriminator (forward only)."""

    def __init__(self, D0_channel_1, D0_channel_2,
                 D0_kernel_1, D0_stride_1, D0_padding_1,
                 D0_kernel_2, D0_stride_2, D0_padding_2,
                 use_leaky_relu, key):
        # TODO(synk): only stride == 1 convs are implemented (the nn.Module
        # signature also accepts other strides); strided taps are omitted.
        assert D0_stride_1 == 1 and D0_stride_2 == 1, \
            "this synthetic kernel implements stride=1 convs"
        self.k1, self.p1 = D0_kernel_1, D0_padding_1
        self.k2, self.p2 = D0_kernel_2, D0_padding_2
        self.neg_slope = 0.1 if use_leaky_relu else 0.0

        C1, C2 = D0_channel_1, D0_channel_2
        ka, kb, kc, kd = jax.random.split(key, 4)
        # Deterministic synthetic init, PyTorch OIHW layout (benchmark stand-in,
        # not loaded from a trained module).
        self.w1 = 0.1 * jax.random.normal(ka, (C2, C1, self.k1, self.k1), jnp.float32)
        self.b1 = 0.1 * jax.random.normal(kb, (C2,), jnp.float32)
        self.w2 = 0.1 * jax.random.normal(kc, (C1, C2, self.k2, self.k2), jnp.float32)
        self.b2 = 0.1 * jax.random.normal(kd, (C1,), jnp.float32)

        # Kernel-side per-tap weight matrices (K*K, Cout, Cin), kept in f32.
        self.w1_taps = jnp.transpose(self.w1, (2, 3, 0, 1)).reshape(
            self.k1 * self.k1, C2, C1)
        self.w2_taps = jnp.transpose(self.w2, (2, 3, 0, 1)).reshape(
            self.k2 * self.k2, C1, C2)

    def __call__(self, x_nchw):
        return _forward(x_nchw, self.w1_taps, self.b1, self.w2_taps, self.b2,
                        K1=self.k1, P1=self.p1, K2=self.k2, P2=self.p2,
                        neg_slope=self.neg_slope,
                        roll_like_jnp=_roll_like_jnp())


def _reference_forward(model, x_nchw):
    """Pure-JAX (XLA conv) reference in f32, NCHW/OIHW like PyTorch."""
    def conv(x, w, b, p, neg):
        y = jax.lax.conv_general_dilated(
            x, w, window_strides=(1, 1), padding=[(p, p), (p, p)],
            dimension_numbers=("NCHW", "OIHW", "NCHW"))
        y = y + b.reshape(1, -1, 1, 1)
        return jnp.where(y >= 0, y, neg * y)

    y = conv(x_nchw, model.w1, model.b1, model.p1, model.neg_slope)
    return conv(y, model.w2, model.b2, model.p2, model.neg_slope)


if __name__ == "__main__":
    key = jax.random.PRNGKey(0)
    k_in, k_model = jax.random.split(key)

    # Small shapes consistent with the module:
    #   C1=4, C2=8, kernel=3, stride=1, padding=1 (both convs), LeakyReLU.
    # Batch 4 so the kernel exercises both Nb=2 per grid step and 2 parallel
    # grid steps (one per v7x TensorCore).
    N, C1, H, W = 4, 4, 16, 16
    C2 = 8

    model = DiscriminatorPallas(
        D0_channel_1=C1, D0_channel_2=C2,
        D0_kernel_1=3, D0_stride_1=1, D0_padding_1=1,
        D0_kernel_2=3, D0_stride_2=1, D0_padding_2=1,
        use_leaky_relu=True, key=k_model)

    x = jax.random.normal(k_in, (N, C1, H, W), jnp.float32)

    out = jax.block_until_ready(model(x))
    assert out.shape == (N, C1, H, W) and out.dtype == jnp.float32

    ref = jax.block_until_ready(_reference_forward(model, x))
    assert jnp.allclose(out, ref, atol=1e-2, rtol=1e-2), "mismatch vs reference"

    print("KERNEL_OK")
</pallas_src>

<mosaic_0001>
module attributes {stable_mosaic.version = 11 : i64} {
  func.func @probe(%arg0: memref<8x128xf32, #tpu.memory_space<vmem>>, %arg1: memref<8x128xf32, #tpu.memory_space<vmem>>) attributes {dimension_semantics = [], scalar_prefetch = 0 : i64, scratch_operands = 0 : i64, tpu.core_type = #tpu.core_type<tc>} {
    %c0 = arith.constant 0 : index
    %c0_0 = arith.constant 0 : index
    %0 = vector.load %arg0[%c0, %c0_0] : memref<8x128xf32, #tpu.memory_space<vmem>>, vector<8x128xf32>
    %c1_i32 = arith.constant 1 : i32
    %1 = tpu.dynamic_rotate %0 by %c1_i32 dim 1 : vector<8x128xf32>, i32 -> vector<8x128xf32>
    %c0_1 = arith.constant 0 : index
    %c0_2 = arith.constant 0 : index
    %2 = vector.load %arg1[%c0_1, %c0_2] : memref<8x128xf32, #tpu.memory_space<vmem>>, vector<8x128xf32>
    tpu.vector_store %arg1[%c0_1, %c0_2], %1 {strides = array<i32>} : memref<8x128xf32, #tpu.memory_space<vmem>>, vector<8x128xf32>,
    return
  }
}

</mosaic_0001>

<bundles_post_ra>
// kernel: tpu_custom_call.1
= control target key start
LH: loop header
LB: loop body
LE: loop exit
PB: predicated region body
PF: predicated region fallthrough
CT: control target
= control target key end

     0   :  { %6 = vsyncpa [#allocation3], 0  ;;  %s118_s0 = inlined_call_operand.hbm [shape: f32[8,128], index: 0, kind: input, shape index: {}]   ;;  %s119_s1 = inlined_call_operand.hbm [shape: f32[8,128], index: 1, kind: output, shape index: {}]  }
   0x1   :  { %7 = vsyncpa [#allocation4], 0  ;;  %s13_s8 = sshll.u32 %s118_s0, 4  ;;  %s99_s9 = smov [#allocation2]   ;;  %s14_s8 = int_to_ptr.hbm [resolvable:$true] %s13_s8 }
   0x2   :  { %s15_s10 = sshll.u32 %s99_s9, 4  ;;  %s16_s10 = int_to_ptr.vmem [resolvable:$true] %s15_s10 }
   0x3   :  { %18 = dma.hbm_to_vmem [thread:$0]  %s14_s8, 128, %s16_s10, [#allocation3]  }
   0x4   :  { %95 = dma.done.wait [#allocation3], 128  }
   0x5   :  { %96 = vsyncadd [#allocation3], 4294967168  ;;  %v23_v0 = vld [vmem:[#allocation2] sm:$0xff]  ;;  %s100_s11 = smov 1   ;;  %s101_s12 = smov [#allocation5]  }
   0x6   :  { %24 = vrot.lane.b32.xlu0 %v23_v0, %s100_s11  ;;  %s32_s13 = sshll.u32 %s101_s12, 4  ;;  %s34_s16 = sshll.u32 %s119_s1, 4  ;;  %s33_s13 = int_to_ptr.vmem [resolvable:$true] %s32_s13  ;;  %s35_s16 = int_to_ptr.hbm [resolvable:$true] %s34_s16 }
  0x78   :  { %v25_v1 = vpop.permute.xlu0 %24 }
  0x79   :  { %26 = vst [vmem:[#allocation5] sm:$0xff] %v25_v1 }
  0x7a   :  { %37 = dma.vmem_to_hbm [thread:$0]  %s33_s13, 128, %s35_s16, [#allocation4]  }
  0x7b   :  { %97 = dma.done.wait [#allocation4], 128  }
  0x7c   :  { %98 = vsyncadd [#allocation4], 4294967168 }
  0x7d   :  { %42 = vsyncpa [#allocation3], 1 }
  0x7e   :  { %43 = vsyncpa [#allocation4], 1 }

</bundles_post_ra>
